<compile_context>
chip_gen: v7x
topology: tpu7x:2x2x1
jax: 0.10.0
libtpu: 0.0.40
codegen_flags: <defaults>
</compile_context>

<pallas_src>
import math
import numpy as np
import jax
import jax.numpy as jnp
from jax.experimental import pallas as pl
from jax.experimental.pallas import tpu as pltpu

NEG_BIG = -9.0e15  # matches the module's -9000000000000000.0 masked fill


def _semgconv_kernel(x_ref, w_ref, attn_ref, diag_ref, bias_ref, out_ref):
    """out[b] = attn @ h1_b + diag * (h0_b - h1_b) + bias,
    with [h0 | h1] = reshape(x, (B*J, Cin)) @ [W0 | W1] in one lane-dense MXU op.

    x_ref    : (B, J, Cin)     input, consumed in its natural layout
    w_ref    : (Cin, 2*Cout)   [W0 | W1], 128 lanes wide
    attn_ref : (J, J)          precomputed softmax of the masked adjacency
    diag_ref : (J, 1)          diag(attn)
    bias_ref : (1, Cout)
    out_ref  : (B, J, Cout)    output in its natural layout (no wrapper transpose)
    """
    B, J, Cin = x_ref.shape
    Cout = out_ref.shape[2]

    # Single fused projection: M = B*J sublane rows, N = 2*Cout = 128 lanes.
    x2d = x_ref[...].reshape(B * J, Cin)
    h = jnp.dot(x2d, w_ref[...], preferred_element_type=jnp.float32)  # (B*J, 2*Cout)

    attn = attn_ref[...]
    diag = diag_ref[...]
    bias = bias_ref[...]

    for b in range(B):  # B is tiny and static: unrolled, one small MXU op each
        hb = h[b * J:(b + 1) * J, :]   # sublane-aligned static slice (J multiple of 8)
        h0 = hb[:, :Cout]
        h1 = hb[:, Cout:]
        out_b = (jnp.dot(attn, h1, preferred_element_type=jnp.float32)
                 + diag * (h0 - h1)
                 + bias)
        out_ref[b] = out_b.astype(out_ref.dtype)


def make_sem_graph_conv(adj, W, e, bias):
    """Factory mirroring SemGraphConv.__init__: parameters are fixed here, and
    every parameter-only computation is precomputed once (numpy, host-side)."""
    adj_np = np.asarray(adj, dtype=np.float32)
    J = adj_np.shape[0]
    mask = adj_np > 0
    rows, cols = np.nonzero(mask)  # row-major == torch's adj[self.m] = self.e order

    # Masked adjacency logits -> stable row softmax (== F.softmax(adj, dim=1)).
    e_np = np.asarray(e, dtype=np.float32).reshape(-1)
    logits = np.full((J, J), NEG_BIG, dtype=np.float32)
    logits[rows, cols] = e_np
    logits = logits - logits.max(axis=1, keepdims=True)
    ex = np.exp(logits)
    attn_np = ex / ex.sum(axis=1, keepdims=True)          # (J, J)
    diag_np = np.diagonal(attn_np).copy().reshape(J, 1)   # (J, 1)

    W_np = np.asarray(W, dtype=np.float32)
    Cin, Cout = W_np.shape[1], W_np.shape[2]
    w_cat_np = np.concatenate([W_np[0], W_np[1]], axis=1)  # (Cin, 2*Cout), lane dense
    bias_np = np.asarray(bias, dtype=np.float32).reshape(1, Cout)

    attn_c = jnp.asarray(attn_np)
    diag_c = jnp.asarray(diag_np)
    w_cat = jnp.asarray(w_cat_np)
    bias_c = jnp.asarray(bias_np)

    vmem = lambda: pl.BlockSpec(memory_space=pltpu.MemorySpace.VMEM)

    @jax.jit
    def forward(x):
        B = x.shape[0]
        # TODO(synk): for large B, grid over batch tiles with BlockSpecs and
        # dimension_semantics=("parallel",) (v7x megacore) instead of one
        # gridless call; not needed at these shapes.
        return pl.pallas_call(
            _semgconv_kernel,
            out_shape=jax.ShapeDtypeStruct((B, J, Cout), jnp.float32),
            in_specs=[vmem(), vmem(), vmem(), vmem(), vmem()],
            out_specs=vmem(),
        )(x.astype(jnp.float32), w_cat, attn_c, diag_c, bias_c)

    return forward


def ref_forward(x, W, e, adj, bias):
    """Pure-JAX reference mirroring the PyTorch forward exactly."""
    h0 = jnp.matmul(x, W[0])
    h1 = jnp.matmul(x, W[1])
    mask = np.asarray(adj) > 0
    rows, cols = np.nonzero(mask)
    A = jnp.full(adj.shape, NEG_BIG, dtype=jnp.float32).at[rows, cols].set(e[0])
    A = jax.nn.softmax(A, axis=1)
    M = jnp.eye(adj.shape[0], dtype=jnp.float32)
    out = jnp.matmul(A * M, h0) + jnp.matmul(A * (1.0 - M), h1)
    return out + bias.reshape(1, 1, -1)


if __name__ == "__main__":
    # Small shapes consistent with the module: B=2, J=16 nodes, 32 -> 64 features.
    B, J, Cin, Cout = 2, 16, 32, 64

    # Deterministic ring-graph adjacency with self loops (J, J), float32.
    adj_np = np.zeros((J, J), dtype=np.float32)
    for i in range(J):
        adj_np[i, i] = 1.0
        adj_np[i, (i + 1) % J] = 1.0
        adj_np[i, (i - 1) % J] = 1.0
    nnz = int((adj_np > 0).sum())

    key = jax.random.PRNGKey(0)
    kx, kw, kb = jax.random.split(key, 3)

    # W: (2, Cin, Cout), xavier-uniform-like init with gain=1.414.
    limit = 1.414 * math.sqrt(6.0 / (Cin + Cout))
    W = jax.random.uniform(kw, (2, Cin, Cout), jnp.float32, -limit, limit)

    # e: (1, nnz) initialized to 1 (nn.init.constant_).
    e = jnp.ones((1, nnz), dtype=jnp.float32)

    # bias: uniform(-stdv, stdv), stdv = 1/sqrt(out_features).
    stdv = 1.0 / math.sqrt(Cout)
    bias = jax.random.uniform(kb, (Cout,), jnp.float32, -stdv, stdv)

    # input: (B, J, Cin)
    x = jax.random.normal(kx, (B, J, Cin), jnp.float32)

    sem_graph_conv = make_sem_graph_conv(adj_np, W, e, bias)
    out = jax.block_until_ready(sem_graph_conv(x))

    ref = jax.block_until_ready(ref_forward(x, W, e, adj_np, bias))
    np.testing.assert_allclose(np.asarray(out), np.asarray(ref), rtol=1e-5, atol=1e-5)

    print("KERNEL_OK")
</pallas_src>

<mosaic_0001>
module attributes {stable_mosaic.version = 11 : i64} {
  func.func @_semgconv_kernel(%arg0: memref<2x16x32xf32, #tpu.memory_space<vmem>>, %arg1: memref<32x128xf32, #tpu.memory_space<vmem>>, %arg2: memref<16x16xf32, #tpu.memory_space<vmem>>, %arg3: memref<16x1xf32, #tpu.memory_space<vmem>>, %arg4: memref<1x64xf32, #tpu.memory_space<vmem>>, %arg5: memref<2x16x64xf32, #tpu.memory_space<vmem>>) attributes {dimension_semantics = [], scalar_prefetch = 0 : i64, scratch_operands = 0 : i64, tpu.core_type = #tpu.core_type<tc>} {
    %c0 = arith.constant 0 : index
    %c0_0 = arith.constant 0 : index
    %c0_1 = arith.constant 0 : index
    %0 = vector.load %arg0[%c0, %c0_0, %c0_1] : memref<2x16x32xf32, #tpu.memory_space<vmem>>, vector<2x16x32xf32>
    %1 = vector.shape_cast %0 : vector<2x16x32xf32> to vector<32x32xf32>
    %c0_2 = arith.constant 0 : index
    %c0_3 = arith.constant 0 : index
    %2 = vector.load %arg1[%c0_2, %c0_3] : memref<32x128xf32, #tpu.memory_space<vmem>>, vector<32x128xf32>
    %cst = arith.constant dense<0.000000e+00> : vector<32x128xf32>
    %3 = tpu.matmul %1, %2, %cst {dimension_numbers = #tpu.dot_dimension_numbers<[1], [0], [0], [1], [0, 0, 1, 1], [], []>} : vector<32x32xf32>, vector<32x128xf32>, vector<32x128xf32> -> vector<32x128xf32>
    %c0_4 = arith.constant 0 : index
    %c0_5 = arith.constant 0 : index
    %4 = vector.load %arg2[%c0_4, %c0_5] : memref<16x16xf32, #tpu.memory_space<vmem>>, vector<16x16xf32>
    %c0_6 = arith.constant 0 : index
    %c0_7 = arith.constant 0 : index
    %5 = vector.load %arg3[%c0_6, %c0_7] : memref<16x1xf32, #tpu.memory_space<vmem>>, vector<16x1xf32>
    %c0_8 = arith.constant 0 : index
    %c0_9 = arith.constant 0 : index
    %6 = vector.load %arg4[%c0_8, %c0_9] : memref<1x64xf32, #tpu.memory_space<vmem>>, vector<1x64xf32>
    %7 = vector.extract_strided_slice %3 {offsets = [0, 0], sizes = [16, 128], strides = [1, 1]} : vector<32x128xf32> to vector<16x128xf32>
    %8 = vector.extract_strided_slice %7 {offsets = [0, 0], sizes = [16, 64], strides = [1, 1]} : vector<16x128xf32> to vector<16x64xf32>
    %9 = vector.extract_strided_slice %7 {offsets = [0, 64], sizes = [16, 64], strides = [1, 1]} : vector<16x128xf32> to vector<16x64xf32>
    %cst_10 = arith.constant dense<0.000000e+00> : vector<16x64xf32>
    %10 = tpu.matmul %4, %9, %cst_10 {dimension_numbers = #tpu.dot_dimension_numbers<[1], [0], [0], [1], [0, 0, 1, 1], [], []>} : vector<16x16xf32>, vector<16x64xf32>, vector<16x64xf32> -> vector<16x64xf32>
    %11 = arith.subf %8, %9 : vector<16x64xf32>
    %12 = vector.broadcast %5 : vector<16x1xf32> to vector<16x64xf32>
    %13 = arith.mulf %12, %11 : vector<16x64xf32>
    %14 = arith.addf %10, %13 : vector<16x64xf32>
    %15 = vector.broadcast %6 : vector<1x64xf32> to vector<16x64xf32>
    %16 = arith.addf %14, %15 : vector<16x64xf32>
    %c0_11 = arith.constant 0 : index
    %c0_12 = arith.constant 0 : index
    %c0_13 = arith.constant 0 : index
    %17 = vector.load %arg5[%c0_11, %c0_12, %c0_13] : memref<2x16x64xf32, #tpu.memory_space<vmem>>, vector<1x16x64xf32>
    %18 = vector.shape_cast %17 : vector<1x16x64xf32> to vector<16x64xf32>
    %19 = vector.shape_cast %16 : vector<16x64xf32> to vector<1x16x64xf32>
    tpu.vector_store %arg5[%c0_11, %c0_12, %c0_13], %19 {strides = array<i32>} : memref<2x16x64xf32, #tpu.memory_space<vmem>>, vector<1x16x64xf32>,
    %20 = vector.extract_strided_slice %3 {offsets = [16, 0], sizes = [16, 128], strides = [1, 1]} : vector<32x128xf32> to vector<16x128xf32>
    %21 = vector.extract_strided_slice %20 {offsets = [0, 0], sizes = [16, 64], strides = [1, 1]} : vector<16x128xf32> to vector<16x64xf32>
    %22 = vector.extract_strided_slice %20 {offsets = [0, 64], sizes = [16, 64], strides = [1, 1]} : vector<16x128xf32> to vector<16x64xf32>
    %cst_14 = arith.constant dense<0.000000e+00> : vector<16x64xf32>
    %23 = tpu.matmul %4, %22, %cst_14 {dimension_numbers = #tpu.dot_dimension_numbers<[1], [0], [0], [1], [0, 0, 1, 1], [], []>} : vector<16x16xf32>, vector<16x64xf32>, vector<16x64xf32> -> vector<16x64xf32>
    %24 = arith.subf %21, %22 : vector<16x64xf32>
    %25 = vector.broadcast %5 : vector<16x1xf32> to vector<16x64xf32>
    %26 = arith.mulf %25, %24 : vector<16x64xf32>
    %27 = arith.addf %23, %26 : vector<16x64xf32>
    %28 = vector.broadcast %6 : vector<1x64xf32> to vector<16x64xf32>
    %29 = arith.addf %27, %28 : vector<16x64xf32>
    %c1 = arith.constant 1 : index
    %c0_15 = arith.constant 0 : index
    %c0_16 = arith.constant 0 : index
    %30 = vector.load %arg5[%c1, %c0_15, %c0_16] : memref<2x16x64xf32, #tpu.memory_space<vmem>>, vector<1x16x64xf32>
    %31 = vector.shape_cast %30 : vector<1x16x64xf32> to vector<16x64xf32>
    %32 = vector.shape_cast %29 : vector<16x64xf32> to vector<1x16x64xf32>
    tpu.vector_store %arg5[%c1, %c0_15, %c0_16], %32 {strides = array<i32>} : memref<2x16x64xf32, #tpu.memory_space<vmem>>, vector<1x16x64xf32>,
    return
  }
}

</mosaic_0001>

<bundles_post_ra>
// kernel: forward.1
= control target key start
LH: loop header
LB: loop body
LE: loop exit
PB: predicated region body
PF: predicated region fallthrough
CT: control target
= control target key end

     0   :  { %10 = vsyncpa [#allocation3], 0  ;;  %s644_s0 = inlined_call_operand.hbm [shape: f32[2,16,32], index: 0, kind: input, shape index: {}]   ;;  %s645_s1 = inlined_call_operand.hbm [shape: f32[32,128], index: 1, kind: input, shape index: {}]   ;;  %s646_s2 = inlined_call_operand.vmem [shape: f32[16,16], index: 2, kind: input, shape index: {}]   ;;  %s647_s3 = inlined_call_operand.vmem [shape: f32[16,1], index: 3, kind: input, shape index: {}]   ;;  %s648_s4 = inlined_call_operand.vmem [shape: f32[1,64], index: 4, kind: input, shape index: {}]   ;;  %s649_s5 = inlined_call_operand.hbm [shape: f32[2,16,64], index: 5, kind: output, shape index: {}]  }
   0x1   :  { %11 = vsyncpa [#allocation6], 0 }
   0x2   :  { %12 = vsyncpa [#allocation4], 0  ;;  %s535_s18 = smov [#allocation2]   ;;  %s463_s22 = scalar_lea.hbm %s644_s0, 512 }
   0x3   :  { %s18_s19 = sshll.u32 %s535_s18, 4  ;;  %p464_p0 = scmp.ne.s32.totalorder %s644_s0, %s463_s22  ;;  %s19_s19 = int_to_ptr.vmem [resolvable:$true] %s18_s19 }
   0x4   :  { %p467_p1 = scmp.lt.u32.totalorder %s463_s22, %s644_s0 }
   0x6   :  { %p469_p2 = pnand %p467_p1, %p464_p0 }
   0x8   :  { %472 = shalt.err (!%p469_p2)
}
   0x9   :  { %s473_s27 = scalar_lea.vmem %s19_s19, 512  ;;  %p478_p4 = scmp.lt.s32.totalorder %s19_s19, %s19_s19 }
   0xa   :  { %p474_p3 = scmp.ne.s32.totalorder %s19_s19, %s473_s27  ;;  %p479_p5 = scmp.lt.s32.totalorder %s473_s27, %s473_s27 }
   0xc   :  { %p480_p6 = por %p479_p5, %p478_p4 }
   0xe   :  { %p481_p7 = pnand %p480_p6, %p474_p3 }
  0x10   :  { %484 = shalt.err (!%p481_p7)
}
  0x11   :  { %s536_s28 = smov 128   ;;  %s537_s29 = smov 8  }
  0x12   :  { %24 = dma.hbm_to_vmem [thread:$0]  %s644_s0, 512, %s19_s19, [#allocation3], %s536_s28, %s536_s28, %s537_s29  }
  0x13   :  { %s538_s7 = smov [#allocation5]   ;;  %s485_s11 = scalar_lea.hbm %s645_s1, 512 }
  0x14   :  { %s30_s8 = sshll.u32 %s538_s7, 4  ;;  %p486_p8 = scmp.ne.s32.totalorder %s645_s1, %s485_s11  ;;  %s31_s8 = int_to_ptr.vmem [resolvable:$true] %s30_s8 }
  0x15   :  { %p489_p9 = scmp.lt.u32.totalorder %s485_s11, %s645_s1 }
  0x17   :  { %p491_p10 = pnand %p489_p9, %p486_p8 }
  0x19   :  { %494 = shalt.err (!%p491_p10)
}
  0x1a   :  { %s495_s16 = scalar_lea.vmem %s31_s8, 512  ;;  %p500_p12 = scmp.lt.s32.totalorder %s31_s8, %s31_s8 }
  0x1b   :  { %p496_p11 = scmp.ne.s32.totalorder %s31_s8, %s495_s16  ;;  %p501_p13 = scmp.lt.s32.totalorder %s495_s16, %s495_s16 }
  0x1d   :  { %p502_p0 = por %p501_p13, %p500_p12 }
  0x1f   :  { %p503_p1 = pnand %p502_p0, %p496_p11 }
  0x21   :  { %506 = shalt.err (!%p503_p1)
}
  0x22   :  { %36 = dma.hbm_to_vmem [thread:$0]  %s645_s1, 512, %s31_s8, [#allocation6], %s536_s28, %s536_s28, %s537_s29  }
  0x23   :  { %529 = dma.done.wait [#allocation3], 512  }
  0x24   :  { %530 = vsyncadd [#allocation3], 4294966784 }
  0x25   :  { %531 = dma.done.wait [#allocation6], 512  }
  0x26   :  { %532 = vsyncadd [#allocation6], 4294966784  ;;  %vm57_vm0 = vcmask 261120   ;;  %v53_v0 = vld [vmem:[#allocation5] sm:$0xff]  ;;  %v54_v1 = vld [vmem:[#allocation5 + $0x8] sm:$0xff]  ;;  %v539_v10 = vmov 0  }
  0x27   :  { %v55_v2 = vld [vmem:[#allocation5 + $0x10] sm:$0xff]  ;;  %v438_v3 = vpack.c.bf16 %v54_v1, %v53_v0  ;;  %v56_v4 = vld [vmem:[#allocation5 + $0x18] sm:$0xff]  ;;  %v49_v5 = vld [vmem:[#allocation2] sm:$0xff]  ;;  %461 = vset.pattern.permute.xlu0 %v539_v10  ;;  %462 = vset.pattern.permute.xlu1 %v539_v10  ;;  %vm182_vm1 = vcmask 130048   ;;  %s540_s19 = smov 64   ;;  %vm272_vm2 = vcmask 523264  }
  0x28   :  { %v442_v6 = vpack.c.bf16 %v56_v4, %v55_v2  ;;  %418 = vmatprep.mubr.msk.f32.mxu0 %vm57_vm0, %v49_v5  ;;  %v50_v7 = vld [vmem:[#allocation2 + $0x8] sm:$0xff]  ;;  %v51_v8 = vld [vmem:[#allocation2 + $0x10] sm:$0xff]  ;;  %v52_v9 = vld [vmem:[#allocation2 + $0x18] sm:$0xff] }
  0x29   :  { %439 = vmatprep.subr.bf16.mxu0 %v438_v3  ;;  %v155_v11 = vld [vmem:[%s646_s2] sm:$0xff]  ;;  %v158_v17 = vld [vmem:[%s647_s3 + $0x8] sm:$0xff] }
  0x2a   :  { %441 = vmatpush3.bf16.msra.mxu0 %v438_v3  ;;  %428 = vmatprep.mubr.msk.f32.mxu1 %vm182_vm1, %v155_v11  ;;  %v157_v16 = vld [vmem:[%s647_s3] sm:$0xff]  ;;  %v156_v26 = vld [vmem:[%s646_s2 + $0x8] sm:$0xff]  ;;  %s541_s2 = smov [#allocation7]  }
  0x2b   :  { %443 = vmatprep.subr.bf16.mxu0 %v442_v6  ;;  %v391_v33 = vld [vmem:[%s648_s4] ss:$0 sm:$0xff]  ;;  %s372_s27 = sshll.u32 %s541_s2, 4  ;;  %s373_s27 = int_to_ptr.vmem [resolvable:$true] %s372_s27 }
  0x2c   :  { %s507_s4 = scalar_lea.vmem %s373_s27, 512  ;;  %p512_p3 = scmp.lt.s32.totalorder %s373_s27, %s373_s27 }
  0x2d   :  { %p508_p2 = scmp.ne.s32.totalorder %s373_s27, %s507_s4  ;;  %p513_p4 = scmp.lt.s32.totalorder %s507_s4, %s507_s4 }
  0x2e   :  { %445 = vmatpush3.bf16.msra.mxu0 %v442_v6 }
  0x2f   :  { %p514_p5 = por %p513_p4, %p512_p3 }
  0x31   :  { %419 = vmatmul.mubr.msk.f32.vlgmr.msra.gmra.mrb[0].mxu0 %vm57_vm0, %v50_v7  ;;  %p515_p6 = pnand %p514_p5, %p508_p2 }
  0x32   :  { %421 = vmatprep.mubr.msk.f32.mxu0 %vm57_vm0, %v51_v8 }
  0x35   :  { %422 = vmatmul.mubr.msk.f32.gmra.mrb[2].mxu0 %vm57_vm0, %v52_v9 }
 0x104   :  { %v420_v12 = vpop.f32.mrb[0].mxu0 }
 0x105   :  { %v136_v13 = vpop.f32.mrb[1].mxu0 }
 0x106   :  { %162 = vrot.lane.b32.xlu0 %v136_v13, %s540_s19 }
 0x108   :  { %v423_v14 = vpop.f32.mrb[2].mxu0 }
 0x109   :  { %v146_v15 = vpop.f32.mrb[3].mxu0 }
 0x10a   :  { %164 = vrot.lane.b32.xlu0 %v420_v12, %s540_s19  ;;  %277 = vrot.lane.b32.xlu1 %v146_v15, %s540_s19 }
 0x10e   :  { %172 = vperm.xlu0 %461, %v157_v16   ;;  %279 = vrot.lane.b32.xlu1 %v423_v14, %s540_s19 }
 0x112   :  { %177 = vperm.xlu1 %462, %v158_v17  }
 0x178   :  { %v163_v18 = vpop.permute.xlu0 %162 }
 0x179   :  { %v168_v19 = vsub.f32 %v136_v13, %v163_v18 }
 0x17c   :  { %v165_v20 = vpop.permute.xlu0 %164  ;;  %v278_v21 = vpop.permute.xlu1 %277 }
 0x17d   :  { %v169_v22 = vsub.f32 %v420_v12, %v165_v20  ;;  %v283_v23 = vsub.f32 %v146_v15, %v278_v21  ;;  %v446_v24 = vpack.c.bf16 %v165_v20, %v163_v18 }
 0x17f   :  { %447 = vmatprep.subr.bf16.mxu1 %v446_v24 }
 0x180   :  { %449 = vmatpush3.bf16.msra.mxu1 %v446_v24  ;;  %v280_v25 = vpop.permute.xlu1 %279 }
 0x181   :  { %v284_v27 = vsub.f32 %v423_v14, %v280_v25  ;;  %v450_v28 = vpack.c.bf16 %v280_v25, %v278_v21 }
 0x183   :  { %429 = vmatmul.mubr.msk.f32.vlgmr.msra.gmra.mrb[0].mxu1 %vm182_vm1, %v156_v26  ;;  %451 = vmatprep.subr.bf16.mxu1 %v450_v28 }
 0x184   :  { %453 = vmatpush3.bf16.msra.mxu1 %v450_v28  ;;  %435 = vmatprep.mubr.msk.f32.mxu1 %vm182_vm1, %v155_v11 }
 0x187   :  { %436 = vmatmul.mubr.msk.f32.vlgmr.msra.gmra.mrb[2].mxu1 %vm182_vm1, %v156_v26 }
 0x18d   :  { %v173_v30 = vpop.permute.xlu0 %172 }
 0x18e   :  { %v180_v32 = vmul.f32 %v173_v30, %v168_v19  ;;  %v285_v40 = vmul.f32 %v283_v23, %v173_v30 }
 0x191   :  { %v178_v29 = vpop.permute.xlu1 %177 }
 0x192   :  { %v181_v31 = vmul.f32 %v178_v29, %v169_v22  ;;  %v286_v38 = vmul.f32 %v284_v27, %v178_v29 }
 0x256   :  { %v430_v34 = vpop.f32.mrb[0].mxu1 }
 0x257   :  { %v261_v35 = vadd.f32 %v430_v34, %v181_v31  ;;  %v255_v36 = vpop.f32.mrb[1].mxu1 }
 0x258   :  { %v256_v37 = vadd.f32 %v255_v36, %v180_v32 }
 0x259   :  { %v271_v39 = vadd.f32 %v391_v33, %v261_v35 }
 0x25a   :  { %v270_v41 = vadd.f32 %v391_v33, %v256_v37  ;;  %v437_v42 = vpop.f32.mrb[2].mxu1 }
 0x25b   :  { %274 = vst.msk [vmem:[#allocation7 + $0x8] sm:$0xff] %vm272_vm2, %v271_v39  ;;  %v359_v43 = vadd.f32 %v437_v42, %v286_v38  ;;  %v353_v44 = vpop.f32.mrb[3].mxu1 }
 0x25c   :  { %273 = vst.msk [vmem:[#allocation7] sm:$0xff] %vm272_vm2, %v270_v41  ;;  %v354_v45 = vadd.f32 %v353_v44, %v285_v40 }
 0x25d   :  { %v363_v46 = vadd.f32 %v391_v33, %v359_v43 }
 0x25e   :  { %v362_v47 = vadd.f32 %v391_v33, %v354_v45 }
 0x25f   :  { %366 = vst.msk [vmem:[#allocation7 + $0x18] sm:$0xff] %vm272_vm2, %v363_v46 }
 0x260   :  { %365 = vst.msk [vmem:[#allocation7 + $0x10] sm:$0xff] %vm272_vm2, %v362_v47 }
 0x261   :  { %518 = shalt.err (!%p515_p6)
}
 0x262   :  { %s519_s7 = scalar_lea.hbm %s649_s5, 512 }
 0x263   :  { %p520_p7 = scmp.ne.s32.totalorder %s649_s5, %s519_s7  ;;  %p523_p8 = scmp.lt.u32.totalorder %s519_s7, %s649_s5 }
 0x265   :  { %p525_p9 = pnand %p523_p8, %p520_p7 }
 0x267   :  { %528 = shalt.err (!%p525_p9)
}
 0x268   :  { %378 = dma.vmem_to_hbm [thread:$0]  %s373_s27, 512, %s649_s5, [#allocation4], %s536_s28, %s536_s28, %s537_s29  }
 0x269   :  { %533 = dma.done.wait [#allocation4], 512  }
 0x26a   :  { %534 = vsyncadd [#allocation4], 4294966784 }
 0x26b   :  { %382 = vsyncpa [#allocation3], 1 }
 0x26c   :  { %383 = vsyncpa [#allocation6], 1 }
 0x26d   :  { %384 = vsyncpa [#allocation4], 1 }

</bundles_post_ra>
